<compile_context>
chip_gen: v7x
topology: tpu7x:2x2x1
jax: 0.10.0
libtpu: 0.0.40
codegen_flags: <defaults>
</compile_context>

<pallas_src>
import functools

import jax
import jax.numpy as jnp
from jax import lax
from jax.experimental import pallas as pl
from jax.experimental.pallas import tpu as pltpu


def _round_up(x, m):
    return (x + m - 1) // m * m


def _vmem_capacity_bytes():
    """Physical VMEM per TensorCore; conservative fallback if the query fails."""
    try:
        return int(pltpu.get_tpu_info().vmem_capacity_bytes)
    except Exception:
        return 64 << 20  # v7x per-TC VMEM -> safe lower bound for all generations


def _choose_blk(n_rows, vocab, itemsize, sublane, vmem_cap):
    """Rows per tile, sized from the real working set and VMEM capacity."""
    # Per-row working-set bytes: double-buffered native-dtype input tile plus
    # ~3 f32 full-tile intermediates (xm, exp(xm), one-hot select temp).
    per_row = vocab * (2 * itemsize + 3 * 4)
    budget = int(vmem_cap * 0.55)            # leave headroom for Mosaic scratch
    blk = max(sublane, budget // max(1, per_row))

    # Streaming-efficiency target for the *input* tile: ~16 MiB when 128 MiB
    # VMEM is available (v5e/v6e), ~4 MiB on 64 MiB parts (v7x).
    target_tile = (16 << 20) if vmem_cap >= (96 << 20) else (4 << 20)
    blk = min(blk, max(sublane, target_tile // max(1, vocab * itemsize)))
    blk = min(blk, 32768)                    # keep per-step epilogue bounded

    rows_padded = _round_up(n_rows, sublane)
    blk = min(blk, rows_padded)              # don't over-pad tiny inputs

    # Megacore load balance on v7x: prefer >= 4 chunks (2 per TC) when the
    # input is large enough that splitting does not shrink tiles below a
    # sublane group.
    if rows_padded >= 4 * sublane:
        blk = min(blk, _round_up(pl.cdiv(rows_padded, 4), sublane))

    return max(sublane, (blk // sublane) * sublane)


def _ls_ce_kernel(logit_ref, tgt_ref, nll_ref, smooth_ref, *, ignore_index, n_rows):
    blk, vocab = logit_ref.shape

    x = logit_ref[...]                         # native dtype tile (bf16 stays packed)
    t = tgt_ref[...]                           # (blk, 1) int32

    # Single fused working quantity: xm = x - rowmax(x)  (f32).
    m = jnp.max(x, axis=-1, keepdims=True).astype(jnp.float32)        # (blk, 1)
    xm = x.astype(jnp.float32) - m                                    # (blk, V) f32

    # All remaining reductions read xm.
    se = jnp.sum(jnp.exp(xm), axis=-1, keepdims=True)                 # sum exp(x - m)
    sum_xm = jnp.sum(xm, axis=-1, keepdims=True)                      # sum (x - m)
    col = lax.broadcasted_iota(jnp.int32, (1, vocab), 1)
    xm_tgt = jnp.sum(jnp.where(col == t, xm, 0.0), axis=-1, keepdims=True)

    log_se = jnp.log(se)
    # nll    = lse - x[target]      = log_se - xm[target]
    # smooth = sum_j (lse - x_j)    = V*log_se - sum_j xm_j
    nll = log_se - xm_tgt
    smooth = jnp.float32(vocab) * log_se - sum_xm

    # Mask padded rows of a ragged final tile and ignore_index rows.  The
    # row-wise where is a select, so NaN/Inf from uninitialized padded rows
    # never propagates into the valid-row sums.
    row = pl.program_id(0) * blk + lax.broadcasted_iota(jnp.int32, (blk, 1), 0)
    valid = row < n_rows
    if ignore_index is not None:
        valid = jnp.logical_and(valid, t != ignore_index)
    nll = jnp.where(valid, nll, 0.0)
    smooth = jnp.where(valid, smooth, 0.0)

    # Per-chunk partial sums broadcast into a lane-dense (1, 8, 128) slab:
    # full-tile unmasked store; each grid step owns a distinct output block,
    # so the single grid axis stays "parallel" (megacore on v7x).
    nll_ref[...] = jnp.broadcast_to(jnp.sum(nll), nll_ref.shape)
    smooth_ref[...] = jnp.broadcast_to(jnp.sum(smooth), smooth_ref.shape)


def cross_entropy_loss(logit, target, eps=0.1, ignore_index=-100, blk=None):
    """Returns (loss, nll_loss) matching CrossEntropyLoss.forward with reduce=True."""
    vocab = logit.shape[-1]
    logit2 = logit.reshape(-1, vocab)              # keep input dtype (bf16 stays bf16)
    tgt2 = target.reshape(-1, 1).astype(jnp.int32)
    n_rows = logit2.shape[0]

    itemsize = jnp.dtype(logit2.dtype).itemsize
    sublane = max(8, 32 // itemsize)               # 8 f32 / 16 bf16 / 32 int8
    vmem_cap = _vmem_capacity_bytes()

    if blk is None:
        blk = _choose_blk(n_rows, vocab, itemsize, sublane, vmem_cap)
    blk = max(sublane, (int(blk) // sublane) * sublane)
    num_chunks = pl.cdiv(n_rows, blk)

    # VMEM budget: double-buffered native-dtype input tile + ~3 f32 working
    # tiles + headroom, capped ~8 MiB below physical capacity.
    work_bytes = 2 * blk * vocab * itemsize + 3 * blk * vocab * 4 + (2 << 20)
    vmem_limit = int(min(vmem_cap - (8 << 20), max(16 << 20, work_bytes)))

    kernel = functools.partial(_ls_ce_kernel, ignore_index=ignore_index, n_rows=n_rows)

    nll_parts, smooth_parts = pl.pallas_call(
        kernel,
        out_shape=(
            jax.ShapeDtypeStruct((num_chunks, 8, 128), jnp.float32),
            jax.ShapeDtypeStruct((num_chunks, 8, 128), jnp.float32),
        ),
        grid_spec=pltpu.PrefetchScalarGridSpec(
            num_scalar_prefetch=0,
            grid=(num_chunks,),
            in_specs=[
                pl.BlockSpec((blk, vocab), lambda i: (i, 0)),
                pl.BlockSpec((blk, 1), lambda i: (i, 0)),
            ],
            out_specs=(
                pl.BlockSpec((1, 8, 128), lambda i: (i, 0, 0)),
                pl.BlockSpec((1, 8, 128), lambda i: (i, 0, 0)),
            ),
        ),
        compiler_params=pltpu.CompilerParams(
            dimension_semantics=("parallel",),
            vmem_limit_bytes=vmem_limit,
        ),
    )(logit2, tgt2)

    nll_loss = jnp.sum(nll_parts[:, 0, 0])
    smooth_loss = jnp.sum(smooth_parts[:, 0, 0])
    eps_i = eps / vocab
    loss = (1.0 - eps) * nll_loss + eps_i * smooth_loss
    return loss, nll_loss


def _reference(logit, target, eps=0.1, ignore_index=-100):
    vocab = logit.shape[-1]
    lp = jax.nn.log_softmax(logit.reshape(-1, vocab).astype(jnp.float32), axis=-1)
    t = target.reshape(-1)
    nll = -jnp.take_along_axis(lp, t[:, None], axis=-1)[:, 0]
    smooth = -jnp.sum(lp, axis=-1)
    valid = t != ignore_index
    nll = jnp.where(valid, nll, 0.0)
    smooth = jnp.where(valid, smooth, 0.0)
    nll_loss = jnp.sum(nll)
    smooth_loss = jnp.sum(smooth)
    loss = (1.0 - eps) * nll_loss + (eps / vocab) * smooth_loss
    return loss, nll_loss


if __name__ == "__main__":
    key = jax.random.PRNGKey(0)
    k1, k2, k3, k4, k5, k6 = jax.random.split(key, 6)
    IGNORE = -100

    # Test 1: f32 logits, batch=2, seq=8, vocab=128 (rows N = 16), auto blk.
    B, T, V = 2, 8, 128
    logit = jax.random.normal(k1, (B, T, V), dtype=jnp.float32)
    target = jax.random.randint(k2, (B, T), 0, V, dtype=jnp.int32)
    target = target.at[0, 0].set(IGNORE)
    target = target.at[1, 3].set(IGNORE)

    loss, nll = cross_entropy_loss(logit, target, eps=0.1, ignore_index=IGNORE)
    loss, nll = jax.block_until_ready((loss, nll))
    ref_loss, ref_nll = _reference(logit, target, eps=0.1, ignore_index=IGNORE)
    assert jnp.allclose(loss, ref_loss, rtol=1e-5, atol=1e-5), (loss, ref_loss)
    assert jnp.allclose(nll, ref_nll, rtol=1e-5, atol=1e-5), (nll, ref_nll)

    # Test 2: bf16 logits fed directly to the kernel + ragged multi-tile path
    # (rows N = 33, blk = 16 (bf16 sublane) -> 3 chunks, last tile 1 valid row).
    B2, T2, V2 = 3, 11, 384
    logit_bf = jax.random.normal(k3, (B2, T2, V2), dtype=jnp.float32).astype(jnp.bfloat16)
    target2 = jax.random.randint(k4, (B2, T2), 0, V2, dtype=jnp.int32)
    target2 = target2.at[2, 10].set(IGNORE)

    loss2, nll2 = cross_entropy_loss(logit_bf, target2, eps=0.1, ignore_index=IGNORE, blk=16)
    loss2, nll2 = jax.block_until_ready((loss2, nll2))
    ref_loss2, ref_nll2 = _reference(logit_bf, target2, eps=0.1, ignore_index=IGNORE)
    assert jnp.allclose(loss2, ref_loss2, rtol=1e-4, atol=1e-4), (loss2, ref_loss2)
    assert jnp.allclose(nll2, ref_nll2, rtol=1e-4, atol=1e-4), (nll2, ref_nll2)

    # Test 3: f32, rows N = 136, vocab 512, auto blk -> multi-chunk (megacore
    # split path) with a ragged final tile.
    B3, T3, V3 = 8, 17, 512
    logit3 = jax.random.normal(k5, (B3, T3, V3), dtype=jnp.float32)
    target3 = jax.random.randint(k6, (B3, T3), 0, V3, dtype=jnp.int32)
    target3 = target3.at[0, 1].set(IGNORE)

    loss3, nll3 = cross_entropy_loss(logit3, target3, eps=0.1, ignore_index=IGNORE)
    loss3, nll3 = jax.block_until_ready((loss3, nll3))
    ref_loss3, ref_nll3 = _reference(logit3, target3, eps=0.1, ignore_index=IGNORE)
    assert jnp.allclose(loss3, ref_loss3, rtol=1e-5, atol=1e-5), (loss3, ref_loss3)
    assert jnp.allclose(nll3, ref_nll3, rtol=1e-5, atol=1e-5), (nll3, ref_nll3)

    print("KERNEL_OK")
</pallas_src>

<mosaic_0001>
module attributes {stable_mosaic.version = 11 : i64} {
  func.func @_ls_ce_kernel(%arg0: i32, %arg1: memref<16x128xf32, #tpu.memory_space<vmem>>, %arg2: memref<16x1xi32, #tpu.memory_space<vmem>>, %arg3: memref<1x8x128xf32, #tpu.memory_space<vmem>>, %arg4: memref<1x8x128xf32, #tpu.memory_space<vmem>>) attributes {dimension_semantics = [#tpu.dimension_semantics<parallel>], iteration_bounds = array<i64: 1>, scalar_prefetch = 0 : i64, scratch_operands = 0 : i64, tpu.core_type = #tpu.core_type<tc>, window_params = [{transform_indices = @transform_0, window_bounds = array<i64: 16, 128>}, {transform_indices = @transform_1, window_bounds = array<i64: 16, 1>}, {transform_indices = @transform_2, window_bounds = array<i64: 1, 8, 128>}, {transform_indices = @transform_3, window_bounds = array<i64: 1, 8, 128>}]} {
    %c0 = arith.constant 0 : index
    %c0_0 = arith.constant 0 : index
    %0 = vector.load %arg1[%c0, %c0_0] : memref<16x128xf32, #tpu.memory_space<vmem>>, vector<16x128xf32>
    %c0_1 = arith.constant 0 : index
    %c0_2 = arith.constant 0 : index
    %1 = vector.load %arg2[%c0_1, %c0_2] : memref<16x1xi32, #tpu.memory_space<vmem>>, vector<16x1xi32>
    %cst = arith.constant dense<0xFF800000> : vector<16xf32>
    %2 = vector.multi_reduction <maximumf>, %0, %cst [1] : vector<16x128xf32> to vector<16xf32>
    %3 = vector.shape_cast %2 : vector<16xf32> to vector<16x1xf32>
    %4 = vector.broadcast %3 : vector<16x1xf32> to vector<16x128xf32>
    %5 = arith.subf %0, %4 : vector<16x128xf32>
    %6 = math.exp %5 : vector<16x128xf32>
    %cst_3 = arith.constant dense<0.000000e+00> : vector<16xf32>
    %7 = vector.multi_reduction <add>, %6, %cst_3 [1] : vector<16x128xf32> to vector<16xf32>
    %8 = vector.shape_cast %7 : vector<16xf32> to vector<16x1xf32>
    %cst_4 = arith.constant dense<0.000000e+00> : vector<16xf32>
    %9 = vector.multi_reduction <add>, %5, %cst_4 [1] : vector<16x128xf32> to vector<16xf32>
    %10 = vector.shape_cast %9 : vector<16xf32> to vector<16x1xf32>
    %11 = tpu.iota {dimensions = array<i32: 1>} : vector<1x128xi32>
    %12 = vector.broadcast %11 : vector<1x128xi32> to vector<16x128xi32>
    %13 = vector.broadcast %1 : vector<16x1xi32> to vector<16x128xi32>
    %14 = arith.cmpi eq, %12, %13 : vector<16x128xi32>
    %cst_5 = arith.constant 0.000000e+00 : f32
    %15 = vector.broadcast %cst_5 : f32 to vector<16x128xf32>
    %16 = arith.select %14, %5, %15 : vector<16x128xi1>, vector<16x128xf32>
    %cst_6 = arith.constant dense<0.000000e+00> : vector<16xf32>
    %17 = vector.multi_reduction <add>, %16, %cst_6 [1] : vector<16x128xf32> to vector<16xf32>
    %18 = vector.shape_cast %17 : vector<16xf32> to vector<16x1xf32>
    %19 = math.log %8 : vector<16x1xf32>
    %20 = arith.subf %19, %18 : vector<16x1xf32>
    %cst_7 = arith.constant 1.280000e+02 : f32
    %21 = vector.broadcast %cst_7 : f32 to vector<16x1xf32>
    %22 = arith.mulf %21, %19 : vector<16x1xf32>
    %23 = arith.subf %22, %10 : vector<16x1xf32>
    %c16_i32 = arith.constant 16 : i32
    %24 = arith.muli %arg0, %c16_i32 : i32
    %25 = tpu.iota {dimensions = array<i32: 0>} : vector<16x1xi32>
    %26 = vector.broadcast %24 : i32 to vector<16x1xi32>
    %27 = arith.addi %26, %25 : vector<16x1xi32>
    %c16_i32_8 = arith.constant 16 : i32
    %28 = vector.broadcast %c16_i32_8 : i32 to vector<16x1xi32>
    %29 = arith.cmpi slt, %27, %28 : vector<16x1xi32>
    %c-100_i32 = arith.constant -100 : i32
    %30 = vector.broadcast %c-100_i32 : i32 to vector<16x1xi32>
    %31 = arith.cmpi ne, %1, %30 : vector<16x1xi32>
    %32 = arith.andi %29, %31 : vector<16x1xi1>
    %cst_9 = arith.constant 0.000000e+00 : f32
    %33 = vector.broadcast %cst_9 : f32 to vector<16x1xf32>
    %34 = arith.select %32, %20, %33 : vector<16x1xi1>, vector<16x1xf32>
    %cst_10 = arith.constant 0.000000e+00 : f32
    %35 = vector.broadcast %cst_10 : f32 to vector<16x1xf32>
    %36 = arith.select %32, %23, %35 : vector<16x1xi1>, vector<16x1xf32>
    %37 = vector.shape_cast %34 : vector<16x1xf32> to vector<1x16x1xf32>
    %cst_11 = arith.constant dense<0.000000e+00> : vector<1xf32>
    %38 = vector.multi_reduction <add>, %37, %cst_11 [1, 2] : vector<1x16x1xf32> to vector<1xf32>
    %39 = vector.shape_cast %38 : vector<1xf32> to vector<1x1x1xf32>
    %40 = vector.extract %39[0, 0, 0] : f32 from vector<1x1x1xf32>
    %41 = vector.broadcast %40 : f32 to vector<1x8x128xf32>
    %c0_12 = arith.constant 0 : index
    %c0_13 = arith.constant 0 : index
    %c0_14 = arith.constant 0 : index
    %42 = vector.load %arg3[%c0_12, %c0_13, %c0_14] : memref<1x8x128xf32, #tpu.memory_space<vmem>>, vector<1x8x128xf32>
    tpu.vector_store %arg3[%c0_12, %c0_13, %c0_14], %41 {strides = array<i32>} : memref<1x8x128xf32, #tpu.memory_space<vmem>>, vector<1x8x128xf32>,
    %43 = vector.shape_cast %36 : vector<16x1xf32> to vector<1x16x1xf32>
    %cst_15 = arith.constant dense<0.000000e+00> : vector<1xf32>
    %44 = vector.multi_reduction <add>, %43, %cst_15 [1, 2] : vector<1x16x1xf32> to vector<1xf32>
    %45 = vector.shape_cast %44 : vector<1xf32> to vector<1x1x1xf32>
    %46 = vector.extract %45[0, 0, 0] : f32 from vector<1x1x1xf32>
    %47 = vector.broadcast %46 : f32 to vector<1x8x128xf32>
    %c0_16 = arith.constant 0 : index
    %c0_17 = arith.constant 0 : index
    %c0_18 = arith.constant 0 : index
    %48 = vector.load %arg4[%c0_16, %c0_17, %c0_18] : memref<1x8x128xf32, #tpu.memory_space<vmem>>, vector<1x8x128xf32>
    tpu.vector_store %arg4[%c0_16, %c0_17, %c0_18], %47 {strides = array<i32>} : memref<1x8x128xf32, #tpu.memory_space<vmem>>, vector<1x8x128xf32>,
    return
  }
  func.func @transform_0(%arg0: i32) -> (i32, i32) {
    %c0_i32 = arith.constant 0 : i32
    %c0_i32_0 = arith.constant 0 : i32
    return %arg0, %c0_i32 : i32, i32
  }
  func.func @transform_1(%arg0: i32) -> (i32, i32) {
    %c0_i32 = arith.constant 0 : i32
    %c0_i32_0 = arith.constant 0 : i32
    return %arg0, %c0_i32 : i32, i32
  }
  func.func @transform_2(%arg0: i32) -> (i32, i32, i32) {
    %c0_i32 = arith.constant 0 : i32
    %c0_i32_0 = arith.constant 0 : i32
    %c0_i32_1 = arith.constant 0 : i32
    return %arg0, %c0_i32, %c0_i32_0 : i32, i32, i32
  }
  func.func @transform_3(%arg0: i32) -> (i32, i32, i32) {
    %c0_i32 = arith.constant 0 : i32
    %c0_i32_0 = arith.constant 0 : i32
    %c0_i32_1 = arith.constant 0 : i32
    return %arg0, %c0_i32, %c0_i32_0 : i32, i32, i32
  }
}

</mosaic_0001>

<bundles_post_ra>
// kernel: tpu_custom_call.1
= control target key start
LH: loop header
LB: loop body
LE: loop exit
PB: predicated region body
PF: predicated region fallthrough
CT: control target
= control target key end

     0   :  { %9 = vsyncpa [#allocation3], 0  ;;  %v202_v2 = vmov 0   ;;  %s261_s0 = inlined_call_operand.vmem [shape: f32[16,128], index: 0, kind: input, shape index: {}]   ;;  %s262_s1 = inlined_call_operand.vmem [shape: s32[16,1], index: 1, kind: input, shape index: {}]   ;;  %s263_s2 = inlined_call_operand.hbm [shape: f32[1,8,128], index: 2, kind: output, shape index: {0}]   ;;  %s264_s3 = inlined_call_operand.hbm [shape: f32[1,8,128], index: 3, kind: output, shape index: {1}]  }
   0x1   :  { %v15_v0 = vld [vmem:[%s261_s0] sm:$0xff]  ;;  %144 = vset.pattern.permute.xlu1 %v202_v2 }
   0x2   :  { %v17_v1 = vld [vmem:[%s262_s1] sm:$0xff]  ;;  %19 = vmax.xlane.f32.xlu0 %v15_v0 }
   0x3   :  { %10 = vsyncpa [#allocation5], 0  ;;  %v16_v3 = vld [vmem:[%s261_s0 + $0x8] sm:$0xff]  ;;  %40 = vperm.xlu1 %144, %v17_v1   ;;  %145 = vset.pattern.permute.xlu0 %v202_v2  ;;  %v37_v12 = vlaneseq  ;;  %vm72_vm2 = vcmp.ne.s32.totalorder %v17_v1, 4294967196  ;;  %vm80_vm4 = vcmask 7168   ;;  %s203_s0 = smov [#allocation2]  }
   0x4   :  { %v18_v4 = vld [vmem:[%s262_s1 + $0x8] sm:$0xff]  ;;  %s115_s1 = sshll.u32 %s203_s0, 4  ;;  %s204_s21 = smov [#allocation4]   ;;  %s116_s1 = int_to_ptr.vmem [resolvable:$true] %s115_s1 }
   0x5   :  { %v38_v15 = vand.u32 127, %v37_v12  ;;  %vm73_vm3 = vcmp.ne.s32.totalorder %v18_v4, 4294967196  ;;  %s125_s22 = sshll.u32 %s204_s21, 4  ;;  %s154_s23 = scalar_lea.vmem %s116_s1, 128  ;;  %s126_s22 = int_to_ptr.vmem [resolvable:$true] %s125_s22 }
   0x6   :  { %21 = vmax.xlane.f32.xlu0 %v16_v3  ;;  %p155_p0 = scmp.ne.s32.totalorder %s116_s1, %s154_s23  ;;  %p159_p1 = scmp.lt.s32.totalorder %s116_s1, %s116_s1 }
   0x7   :  { %43 = vperm.xlu1 %144, %v18_v4   ;;  %p160_p2 = scmp.lt.s32.totalorder %s154_s23, %s154_s23 }
   0x9   :  { %p161_p3 = por %p160_p2, %p159_p1 }
   0xb   :  { %p162_p4 = pnand %p161_p3, %p155_p0 }
  0x82   :  { %v41_v14 = vpop.permute.xlu1 %40 }
  0x83   :  { %vm45_vm0 = vcmp.eq.s32.totalorder %v38_v15, %v41_v14 }
  0x86   :  { %v44_v16 = vpop.permute.xlu1 %43 }
  0x87   :  { %vm46_vm1 = vcmp.eq.s32.totalorder %v38_v15, %v44_v16 }
  0x8f   :  { %v20_v5 = vpop.xlane.xlu0 %19 }
  0x90   :  { %v23_v6 = vsub.f32 %v15_v0, %v20_v5 }
  0x92   :  { %v25_v7 = vmul.f32 1.442695, %v23_v6  ;;  %v47_v17 = vsel %vm45_vm0, %v23_v6, 0.0 }
  0x93   :  { %v22_v8 = vpop.xlane.xlu0 %21 }
  0x94   :  { %146 = vpow2.f32 %v25_v7  ;;  %v24_v9 = vsub.f32 %v16_v3, %v22_v8 }
  0x96   :  { %v27_v10 = vmul.f32 1.442695, %v24_v9  ;;  %v48_v18 = vsel %vm46_vm1, %v24_v9, 0.0 }
  0x98   :  { %148 = vpow2.f32 %v27_v10 }
  0x9e   :  { %v147_v11 = vpop.eup %146 }
  0x9f   :  { %29 = vadd.xlane.f32.xlu0 %v147_v11 }
  0xa2   :  { %v149_v13 = vpop.eup %148 }
  0xa3   :  { %33 = vadd.xlane.f32.xlu0 %v23_v6  ;;  %31 = vadd.xlane.f32.xlu1 %v149_v13 }
  0xa7   :  { %35 = vadd.xlane.f32.xlu0 %v24_v9 }
  0xab   :  { %49 = vadd.xlane.f32.xlu0 %v47_v17 }
  0xaf   :  { %51 = vadd.xlane.f32.xlu0 %v48_v18 }
 0x12c   :  { %v30_v19 = vpop.xlane.xlu0 %29 }
 0x12d   :  { %150 = vlog2.f32 %v30_v19 }
 0x130   :  { %v32_v20 = vpop.xlane.xlu1 %31  ;;  %v34_v21 = vpop.xlane.xlu0 %33 }
 0x131   :  { %152 = vlog2.f32 %v32_v20 }
 0x134   :  { %v36_v22 = vpop.xlane.xlu0 %35 }
 0x137   :  { %v151_v23 = vpop.eup %150 }
 0x138   :  { %v54_v24 = vmul.f32 0.6931472, %v151_v23  ;;  %v50_v25 = vpop.xlane.xlu0 %49 }
 0x13a   :  { %v59_v26 = vmul.f32 128.0, %v54_v24  ;;  %v57_v27 = vsub.f32 %v54_v24, %v50_v25 }
 0x13b   :  { %v153_v28 = vpop.eup %152 }
 0x13c   :  { %v56_v29 = vmul.f32 0.6931472, %v153_v28  ;;  %v61_v30 = vsub.f32 %v59_v26, %v34_v21  ;;  %v52_v31 = vpop.xlane.xlu0 %51  ;;  %v76_v33 = vsel %vm72_vm2, %v57_v27, 0.0 }
 0x13d   :  { %v81_v38 = vsel %vm80_vm4, %v76_v33, 0.0 }
 0x13e   :  { %v60_v32 = vmul.f32 128.0, %v56_v29  ;;  %v58_v34 = vsub.f32 %v56_v29, %v52_v31  ;;  %v78_v35 = vsel %vm72_vm2, %v61_v30, 0.0 }
 0x13f   :  { %v95_v42 = vsel %vm80_vm4, %v78_v35, 0.0 }
 0x140   :  { %v62_v36 = vsub.f32 %v60_v32, %v36_v22  ;;  %v77_v37 = vsel %vm73_vm3, %v58_v34, 0.0 }
 0x141   :  { %v82_v39 = vsel %vm80_vm4, %v77_v37, 0.0 }
 0x142   :  { %v79_v40 = vsel %vm73_vm3, %v62_v36, 0.0  ;;  %v83_v41 = vadd.f32 %v82_v39, %v81_v38 }
 0x143   :  { %v96_v43 = vsel %vm80_vm4, %v79_v40, 0.0 }
 0x144   :  { %84 = vadd.xlane.f32.xlu0 %v83_v41  ;;  %v97_v44 = vadd.f32 %v96_v43, %v95_v42 }
 0x148   :  { %98 = vadd.xlane.f32.xlu0 %v97_v44 }
 0x1d1   :  { %v85_v45 = vpop.xlane.xlu0 %84 }
 0x1d2   :  { %v86_v46 = vrot.slane %v85_v45, 4 }
 0x1d4   :  { %v87_v47 = vadd.f32 %v86_v46, %v85_v45 }
 0x1d5   :  { %v99_v48 = vpop.xlane.xlu0 %98 }
 0x1d6   :  { %v88_v49 = vrot.slane %v87_v47, 2  ;;  %v100_v50 = vrot.slane %v99_v48, 4 }
 0x1d8   :  { %v101_v51 = vadd.f32 %v100_v50, %v99_v48  ;;  %v89_v52 = vadd.f32 %v88_v49, %v87_v47 }
 0x1da   :  { %v102_v53 = vrot.slane %v101_v51, 2  ;;  %v90_v54 = vrot.slane %v89_v52, 1 }
 0x1dc   :  { %v103_v55 = vadd.f32 %v102_v53, %v101_v51  ;;  %v91_v56 = vadd.f32 %v90_v54, %v89_v52 }
 0x1de   :  { %137 = vpush %v91_v56  ;;  %v104_v57 = vrot.slane %v103_v55, 1 }
 0x1e0   :  { %v105_v58 = vadd.f32 %v104_v57, %v103_v55 }
 0x1e2   :  { %139 = vpush %v105_v58 }
 0x20f   :  { %s138_s20 = spop %137 }
 0x210   :  { %v93_v59 = vstv %s138_s20 }
 0x211   :  { %94 = vst [vmem:[#allocation2] sm:$0xff] %v93_v59 }
 0x212   :  { %165 = shalt.err (!%p162_p4)
}
 0x213   :  { %s166_s26 = scalar_lea.hbm %s263_s2, 128 }
 0x214   :  { %p167_p5 = scmp.ne.s32.totalorder %s263_s2, %s166_s26  ;;  %p170_p6 = scmp.lt.u32.totalorder %s166_s26, %s263_s2 }
 0x216   :  { %p172_p7 = pnand %p170_p6, %p167_p5 }
 0x218   :  { %175 = shalt.err (!%p172_p7)
}
 0x219   :  { %118 = dma.vmem_to_hbm [thread:$0]  %s116_s1, 128, %s263_s2, [#allocation3]  }
 0x21a   :  { %s140_s6 = spop %139  ;;  %s176_s7 = scalar_lea.vmem %s126_s22, 128 }
 0x21b   :  { %v107_v60 = vstv %s140_s6  ;;  %p177_p8 = scmp.ne.s32.totalorder %s126_s22, %s176_s7  ;;  %p181_p9 = scmp.lt.s32.totalorder %s126_s22, %s126_s22 }
 0x21c   :  { %108 = vst [vmem:[#allocation4] sm:$0xff] %v107_v60  ;;  %p182_p10 = scmp.lt.s32.totalorder %s176_s7, %s176_s7 }
 0x21e   :  { %p183_p11 = por %p182_p10, %p181_p9 }
 0x220   :  { %p184_p12 = pnand %p183_p11, %p177_p8 }
 0x222   :  { %187 = shalt.err (!%p184_p12)
}
 0x223   :  { %s188_s10 = scalar_lea.hbm %s264_s3, 128 }
 0x224   :  { %p189_p13 = scmp.ne.s32.totalorder %s264_s3, %s188_s10  ;;  %p192_p0 = scmp.lt.u32.totalorder %s188_s10, %s264_s3 }
 0x226   :  { %p194_p1 = pnand %p192_p0, %p189_p13 }
 0x228   :  { %197 = shalt.err (!%p194_p1)
}
 0x229   :  { %128 = dma.vmem_to_hbm [thread:$0]  %s126_s22, 128, %s264_s3, [#allocation5]  }
 0x22a   :  { %198 = dma.done.wait [#allocation3], 128  }
 0x22b   :  { %199 = vsyncadd [#allocation3], 4294967168 }
 0x22c   :  { %200 = dma.done.wait [#allocation5], 128  }
 0x22d   :  { %201 = vsyncadd [#allocation5], 4294967168 }
 0x22e   :  { %135 = vsyncpa [#allocation3], 1 }
 0x22f   :  { %136 = vsyncpa [#allocation5], 1 }

</bundles_post_ra>
